<compile_context>
chip_gen: v7x
topology: tpu7x:2x2x1
jax: 0.10.0
libtpu: 0.0.40
codegen_flags: <defaults>
</compile_context>

<pallas_src>
import functools
import math

import jax
import jax.numpy as jnp
from jax import lax
from jax.experimental import pallas as pl
from jax.experimental.pallas import tpu as pltpu


def att_mhd_kernel(len_ref,    # (Bb, 1)      int32 valid lengths
                   enc_ref,    # (Bb, Tp, E)
                   dec_ref,    # (Bb, D)
                   wk_ref,     # (E, H*Ak)    fused, pre-transposed mlp_k weights
                   wv_ref,     # (E, H*Av)    fused, pre-transposed mlp_v weights
                   wq_ref,     # (D, H*Ak)    fused, pre-transposed mlp_q weights
                   bq_ref,     # (1, H*Ak)    fused mlp_q biases
                   wo_ref,     # (H*Av, E)    pre-transposed mlp_o weight
                   c_ref,      # (Bb, E)      output context
                   w_ref,      # (H, Bb, Tp)  output attention weights (head-major)
                   c_scr,      # (Bb, H*Av)   f32 scratch: concat-free head contexts
                   *, aheads, att_dim_k, att_dim_v, scaling):
    H, Ak, Av = aheads, att_dim_k, att_dim_v
    Bb, Tp, E = enc_ref.shape

    enc = enc_ref[...]                       # (Bb, Tp, E)
    enc2 = enc.reshape(Bb * Tp, E)           # leading-dim merge; lane dim unchanged
    dec = dec_ref[...]                       # (Bb, D)

    # Fused projections: ONE MXU matmul per projection covering all heads.
    k_all = jnp.tanh(jnp.dot(enc2, wk_ref[...],
                             preferred_element_type=jnp.float32))        # (Bb*Tp, H*Ak)
    v_all = jnp.dot(enc2, wv_ref[...], preferred_element_type=jnp.float32)  # (Bb*Tp, H*Av)
    q_all = jnp.tanh(jnp.dot(dec, wq_ref[...],
                             preferred_element_type=jnp.float32)
                     + bq_ref[...]) * scaling                             # (Bb, H*Ak)

    k3 = k_all.reshape(Bb, Tp, H * Ak)
    v3 = v_all.reshape(Bb, Tp, H * Av)

    # Padding mask, lane-major (Bb, Tp): valid where t < length.
    t_idx = lax.broadcasted_iota(jnp.int32, (Bb, Tp), 1)
    valid = t_idx < len_ref[...]             # (Bb, Tp) bool

    for h in range(H):                       # small static head loop (VPU/XLU work only)
        k_h = k3[:, :, h * Ak:(h + 1) * Ak]  # (Bb, Tp, Ak)
        v_h = v3[:, :, h * Av:(h + 1) * Av]  # (Bb, Tp, Av)
        q_h = q_all[:, h * Ak:(h + 1) * Ak]  # (Bb, Ak)

        # Dot-product scores, lane-major (Bb, Tp); scaling already folded into q.
        e_h = jnp.sum(k_h * q_h[:, None, :], axis=2)
        e_h = jnp.where(valid, e_h, -jnp.inf)

        # Softmax over T (lane axis), EXACT normalization.  NOTE: rows with
        # length == 0 would produce NaN, same as the PyTorch reference.
        m = jnp.max(e_h, axis=-1, keepdims=True)
        p = jnp.exp(e_h - m)
        w_h = p / jnp.sum(p, axis=-1, keepdims=True)                     # (Bb, Tp)

        w_ref[h] = w_h.astype(w_ref.dtype)        # dense (Bb, Tp) slab store
        # Context per head: weighted sum over T -> (Bb, Av), written into its
        # lane segment of the scratch (no concatenate).
        c_scr[:, h * Av:(h + 1) * Av] = jnp.sum(v_h * w_h[:, :, None], axis=1)

    # Output projection: one MXU matmul on the concatenated head contexts.
    c_ref[...] = jnp.dot(c_scr[...], wo_ref[...],
                         preferred_element_type=jnp.float32).astype(c_ref.dtype)


def _vmem_limit_bytes():
    """Generation-aware VMEM limit (v7x has 64 MiB/TC) with a safe fallback."""
    try:
        cap = int(pltpu.get_tpu_info().vmem_capacity_bytes)
    except Exception:
        cap = 64 << 20
    return max(32 << 20, min(int(cap * 0.6), 96 << 20))


def _choose_block_b(B, Tp, E, D, H, Ak, Av, budget_bytes):
    """Batch block sized from the real per-row VMEM footprint (incl. K/V)."""
    per_row = 4 * (2 * Tp * E                # double-buffered enc block
                   + Tp * H * (Ak + Av)      # K_all / V_all intermediates
                   + 4 * H * Tp              # scores/exp + double-buffered w out
                   + 2 * (D + E)             # dec in / c out blocks
                   + H * Av)                 # context scratch
    blk = budget_bytes // max(per_row, 1)
    if blk >= B:
        blk = B
    else:
        blk = max(8, (blk // 8) * 8)
    if B >= 16:
        # keep >= 2 grid steps so dimension_semantics=("parallel",) can shard
        # across v7x's two TensorCores (harmless on v5e/v6e).
        half = max(8, ((B + 15) // 16) * 8)
        blk = min(blk, half)
    return int(blk)


def att_multihead_dot_forward(enc_hs_pad, enc_hs_len, dec_z, params,
                              att_prev=None, *, block_b=None):
    """AttMultiHeadDot forward in Pallas.

    enc_hs_pad: (B, T, eprojs) f32
    enc_hs_len: (B,) int lengths
    dec_z:      (B, dunits) f32
    params:     (W_q (H,Ak,D), b_q (H,Ak), W_k (H,Ak,E), W_v (H,Av,E), W_o (E,H*Av))
    att_prev:   unused (matches the PyTorch module)
    returns (c: (B, eprojs), w: (B, H, T))
    """
    del att_prev
    W_q, b_q, W_k, W_v, W_o = params
    H, Ak, D = W_q.shape
    Av = W_v.shape[1]
    B, T, E = enc_hs_pad.shape
    scaling = 1.0 / math.sqrt(Ak)

    # ---- pad T to a sublane multiple: layout-free (Bb,Tp,.)<->(Bb*Tp,.) reshapes
    Tp = ((T + 7) // 8) * 8
    enc_p = enc_hs_pad if Tp == T else jnp.pad(enc_hs_pad, ((0, 0), (0, Tp - T), (0, 0)))

    vmem_limit = _vmem_limit_bytes()

    # ---- batch block selection (sublane-dense: == B or a multiple of 8) ----
    if block_b is None:
        block_b = _choose_block_b(B, Tp, E, D, H, Ak, Av, vmem_limit // 3)
    block_b = int(block_b)
    if block_b >= B:
        block_b = B
    elif block_b % 8 != 0:
        block_b = max(8, (block_b // 8) * 8)

    Bp = ((B + block_b - 1) // block_b) * block_b
    dec_p = dec_z
    lens = jnp.asarray(enc_hs_len, dtype=jnp.int32)
    if Bp != B:
        pad = Bp - B
        enc_p = jnp.pad(enc_p, ((0, pad), (0, 0), (0, 0)))
        dec_p = jnp.pad(dec_p, ((0, pad), (0, 0)))
        # padded rows get full length so their softmax stays finite; sliced away below
        lens = jnp.concatenate([lens, jnp.full((pad,), Tp, dtype=jnp.int32)])
    lens2 = lens.reshape(Bp, 1)

    # ---- host-side weight prep: fuse all heads into single matmul operands ----
    Wk_all = jnp.transpose(W_k, (2, 0, 1)).reshape(E, H * Ak)   # (E, H*Ak)
    Wv_all = jnp.transpose(W_v, (2, 0, 1)).reshape(E, H * Av)   # (E, H*Av)
    Wq_all = jnp.transpose(W_q, (2, 0, 1)).reshape(D, H * Ak)   # (D, H*Ak)
    bq_all = b_q.reshape(1, H * Ak)                             # (1, H*Ak)
    Wo_t = W_o.T                                                # (H*Av, E)

    grid = (Bp // block_b,)
    grid_spec = pltpu.PrefetchScalarGridSpec(
        num_scalar_prefetch=0,
        grid=grid,
        in_specs=[
            pl.BlockSpec((block_b, 1), lambda i: (i, 0)),          # lengths
            pl.BlockSpec((block_b, Tp, E), lambda i: (i, 0, 0)),   # enc block
            pl.BlockSpec((block_b, D), lambda i: (i, 0)),          # dec block
            pl.BlockSpec((E, H * Ak), lambda i: (0, 0)),           # Wk_all
            pl.BlockSpec((E, H * Av), lambda i: (0, 0)),           # Wv_all
            pl.BlockSpec((D, H * Ak), lambda i: (0, 0)),           # Wq_all
            pl.BlockSpec((1, H * Ak), lambda i: (0, 0)),           # bq_all
            pl.BlockSpec((H * Av, E), lambda i: (0, 0)),           # Wo^T
        ],
        out_specs=(
            pl.BlockSpec((block_b, E), lambda i: (i, 0)),          # c
            pl.BlockSpec((H, block_b, Tp), lambda i: (0, i, 0)),   # w (head-major)
        ),
        scratch_shapes=[pltpu.VMEM((block_b, H * Av), jnp.float32)],
    )

    kernel = functools.partial(att_mhd_kernel, aheads=H, att_dim_k=Ak,
                               att_dim_v=Av, scaling=scaling)

    c_p, w_p = pl.pallas_call(
        kernel,
        out_shape=(
            jax.ShapeDtypeStruct((Bp, E), jnp.float32),
            jax.ShapeDtypeStruct((H, Bp, Tp), jnp.float32),
        ),
        grid_spec=grid_spec,
        compiler_params=pltpu.CompilerParams(
            dimension_semantics=("parallel",),
            vmem_limit_bytes=vmem_limit,
        ),
    )(lens2, enc_p, dec_p, Wk_all, Wv_all, Wq_all, bq_all, Wo_t)

    c = c_p[:B]
    w = jnp.transpose(w_p, (1, 0, 2))[:B, :, :T]    # (B, H, T), matches reference
    return c, w


def att_mhd_ref(enc_hs_pad, enc_hs_len, dec_z, params):
    """Pure-JAX reference matching the PyTorch AttMultiHeadDot forward."""
    W_q, b_q, W_k, W_v, W_o = params
    H, Ak, _ = W_q.shape
    scaling = 1.0 / math.sqrt(Ak)
    B, T, _ = enc_hs_pad.shape
    pad_mask = jnp.arange(T)[None, :] >= enc_hs_len[:, None]     # True at padded t
    cs, ws = [], []
    for h in range(H):
        k = jnp.tanh(enc_hs_pad @ W_k[h].T)                      # (B, T, Ak)
        v = enc_hs_pad @ W_v[h].T                                # (B, T, Av)
        q = jnp.tanh(dec_z @ W_q[h].T + b_q[h])                  # (B, Ak)
        e = jnp.sum(k * q[:, None, :], axis=2)                   # (B, T)
        e = jnp.where(pad_mask, -jnp.inf, e)
        w = jax.nn.softmax(scaling * e, axis=1)
        ws.append(w)
        cs.append(jnp.sum(v * w[:, :, None], axis=1))            # (B, Av)
    c = jnp.concatenate(cs, axis=1) @ W_o.T                      # (B, E)
    return c, jnp.stack(ws, axis=1)                              # (B, H, T)


if __name__ == "__main__":
    B, T, EPROJS, DUNITS = 4, 16, 32, 48
    AHEADS, ATT_DIM_K, ATT_DIM_V = 2, 16, 24

    key = jax.random.PRNGKey(0)
    keys = jax.random.split(key, 9)

    # Deterministic synthetic parameters (shapes follow the nn.Linear layers).
    W_q = jax.random.normal(keys[0], (AHEADS, ATT_DIM_K, DUNITS), jnp.float32) * 0.3
    b_q = jax.random.normal(keys[1], (AHEADS, ATT_DIM_K), jnp.float32) * 0.3
    W_k = jax.random.normal(keys[2], (AHEADS, ATT_DIM_K, EPROJS), jnp.float32) * 0.3
    W_v = jax.random.normal(keys[3], (AHEADS, ATT_DIM_V, EPROJS), jnp.float32) * 0.3
    W_o = jax.random.normal(keys[4], (EPROJS, AHEADS * ATT_DIM_V), jnp.float32) * 0.3
    params = (W_q, b_q, W_k, W_v, W_o)

    # --- test 1: whole batch in one block (block_b == B) ---
    enc_hs_pad = jax.random.normal(keys[5], (B, T, EPROJS), jnp.float32)
    dec_z = jax.random.normal(keys[6], (B, DUNITS), jnp.float32)
    enc_hs_len = jnp.array([T, 9, 1, 12], dtype=jnp.int32)

    c, w = att_multihead_dot_forward(enc_hs_pad, enc_hs_len, dec_z, params)
    c, w = jax.block_until_ready((c, w))

    c_r, w_r = att_mhd_ref(enc_hs_pad, enc_hs_len, dec_z, params)
    assert jnp.allclose(c, c_r, rtol=2e-3, atol=2e-3), "context mismatch (single block)"
    assert jnp.allclose(w, w_r, rtol=2e-3, atol=2e-3), "attention-weight mismatch (single block)"

    # --- test 2: multi-step grid with batch padding (B=10 -> 16, block_b=8) ---
    B2 = 10
    enc2 = jax.random.normal(keys[7], (B2, T, EPROJS), jnp.float32)
    dec2 = jax.random.normal(keys[8], (B2, DUNITS), jnp.float32)
    len2 = jnp.array([16, 3, 7, 1, 10, 16, 5, 9, 2, 12], dtype=jnp.int32)

    c2, w2 = att_multihead_dot_forward(enc2, len2, dec2, params, block_b=8)
    c2, w2 = jax.block_until_ready((c2, w2))

    c2_r, w2_r = att_mhd_ref(enc2, len2, dec2, params)
    assert jnp.allclose(c2, c2_r, rtol=2e-3, atol=2e-3), "context mismatch (multi block)"
    assert jnp.allclose(w2, w2_r, rtol=2e-3, atol=2e-3), "attention-weight mismatch (multi block)"

    print("KERNEL_OK")
</pallas_src>

<mosaic_0001>
module attributes {stable_mosaic.version = 11 : i64} {
  func.func @att_mhd_kernel(%arg0: i32, %arg1: memref<4x1xi32, #tpu.memory_space<vmem>>, %arg2: memref<4x16x32xf32, #tpu.memory_space<vmem>>, %arg3: memref<4x48xf32, #tpu.memory_space<vmem>>, %arg4: memref<32x32xf32, #tpu.memory_space<vmem>>, %arg5: memref<32x48xf32, #tpu.memory_space<vmem>>, %arg6: memref<48x32xf32, #tpu.memory_space<vmem>>, %arg7: memref<1x32xf32, #tpu.memory_space<vmem>>, %arg8: memref<48x32xf32, #tpu.memory_space<vmem>>, %arg9: memref<4x32xf32, #tpu.memory_space<vmem>>, %arg10: memref<2x4x16xf32, #tpu.memory_space<vmem>>, %arg11: memref<4x48xf32, #tpu.memory_space<vmem>>) attributes {dimension_semantics = [#tpu.dimension_semantics<parallel>], iteration_bounds = array<i64: 1>, scalar_prefetch = 0 : i64, scratch_operands = 1 : i64, tpu.core_type = #tpu.core_type<tc>, window_params = [{transform_indices = @transform_0, window_bounds = array<i64: 4, 1>}, {transform_indices = @transform_1, window_bounds = array<i64: 4, 16, 32>}, {transform_indices = @transform_2, window_bounds = array<i64: 4, 48>}, {pipeline_mode = #tpu.pipeline_mode<synchronous>, transform_indices = @transform_3, window_bounds = array<i64: 32, 32>}, {pipeline_mode = #tpu.pipeline_mode<synchronous>, transform_indices = @transform_4, window_bounds = array<i64: 32, 48>}, {pipeline_mode = #tpu.pipeline_mode<synchronous>, transform_indices = @transform_5, window_bounds = array<i64: 48, 32>}, {pipeline_mode = #tpu.pipeline_mode<synchronous>, transform_indices = @transform_6, window_bounds = array<i64: 1, 32>}, {pipeline_mode = #tpu.pipeline_mode<synchronous>, transform_indices = @transform_7, window_bounds = array<i64: 48, 32>}, {transform_indices = @transform_8, window_bounds = array<i64: 4, 32>}, {transform_indices = @transform_9, window_bounds = array<i64: 2, 4, 16>}]} {
    %c0 = arith.constant 0 : index
    %c0_0 = arith.constant 0 : index
    %c0_1 = arith.constant 0 : index
    %0 = vector.load %arg2[%c0, %c0_0, %c0_1] : memref<4x16x32xf32, #tpu.memory_space<vmem>>, vector<4x16x32xf32>
    %1 = vector.shape_cast %0 : vector<4x16x32xf32> to vector<64x32xf32>
    %c0_2 = arith.constant 0 : index
    %c0_3 = arith.constant 0 : index
    %2 = vector.load %arg3[%c0_2, %c0_3] : memref<4x48xf32, #tpu.memory_space<vmem>>, vector<4x48xf32>
    %c0_4 = arith.constant 0 : index
    %c0_5 = arith.constant 0 : index
    %3 = vector.load %arg4[%c0_4, %c0_5] : memref<32x32xf32, #tpu.memory_space<vmem>>, vector<32x32xf32>
    %cst = arith.constant dense<0.000000e+00> : vector<64x32xf32>
    %4 = tpu.matmul %1, %3, %cst {dimension_numbers = #tpu.dot_dimension_numbers<[1], [0], [0], [1], [0, 0, 1, 1], [], []>} : vector<64x32xf32>, vector<32x32xf32>, vector<64x32xf32> -> vector<64x32xf32>
    %5 = math.tanh %4 : vector<64x32xf32>
    %c0_6 = arith.constant 0 : index
    %c0_7 = arith.constant 0 : index
    %6 = vector.load %arg5[%c0_6, %c0_7] : memref<32x48xf32, #tpu.memory_space<vmem>>, vector<32x48xf32>
    %cst_8 = arith.constant dense<0.000000e+00> : vector<64x48xf32>
    %7 = tpu.matmul %1, %6, %cst_8 {dimension_numbers = #tpu.dot_dimension_numbers<[1], [0], [0], [1], [0, 0, 1, 1], [], []>} : vector<64x32xf32>, vector<32x48xf32>, vector<64x48xf32> -> vector<64x48xf32>
    %c0_9 = arith.constant 0 : index
    %c0_10 = arith.constant 0 : index
    %8 = vector.load %arg6[%c0_9, %c0_10] : memref<48x32xf32, #tpu.memory_space<vmem>>, vector<48x32xf32>
    %cst_11 = arith.constant dense<0.000000e+00> : vector<4x32xf32>
    %9 = tpu.matmul %2, %8, %cst_11 {dimension_numbers = #tpu.dot_dimension_numbers<[1], [0], [0], [1], [0, 0, 1, 1], [], []>} : vector<4x48xf32>, vector<48x32xf32>, vector<4x32xf32> -> vector<4x32xf32>
    %c0_12 = arith.constant 0 : index
    %c0_13 = arith.constant 0 : index
    %10 = vector.load %arg7[%c0_12, %c0_13] : memref<1x32xf32, #tpu.memory_space<vmem>>, vector<1x32xf32>
    %11 = vector.broadcast %10 : vector<1x32xf32> to vector<4x32xf32>
    %12 = arith.addf %9, %11 : vector<4x32xf32>
    %13 = math.tanh %12 : vector<4x32xf32>
    %cst_14 = arith.constant 2.500000e-01 : f32
    %14 = vector.broadcast %cst_14 : f32 to vector<4x32xf32>
    %15 = arith.mulf %13, %14 : vector<4x32xf32>
    %16 = vector.shape_cast %5 : vector<64x32xf32> to vector<4x16x32xf32>
    %17 = vector.shape_cast %7 : vector<64x48xf32> to vector<4x16x48xf32>
    %18 = tpu.iota {dimensions = array<i32: 1>} : vector<4x16xi32>
    %c0_15 = arith.constant 0 : index
    %c0_16 = arith.constant 0 : index
    %19 = vector.load %arg1[%c0_15, %c0_16] : memref<4x1xi32, #tpu.memory_space<vmem>>, vector<4x1xi32>
    %20 = vector.broadcast %19 : vector<4x1xi32> to vector<4x16xi32>
    %21 = arith.cmpi slt, %18, %20 : vector<4x16xi32>
    %22 = vector.extract_strided_slice %16 {offsets = [0, 0, 0], sizes = [4, 16, 16], strides = [1, 1, 1]} : vector<4x16x32xf32> to vector<4x16x16xf32>
    %23 = vector.extract_strided_slice %17 {offsets = [0, 0, 0], sizes = [4, 16, 24], strides = [1, 1, 1]} : vector<4x16x48xf32> to vector<4x16x24xf32>
    %24 = vector.extract_strided_slice %15 {offsets = [0, 0], sizes = [4, 16], strides = [1, 1]} : vector<4x32xf32> to vector<4x16xf32>
    %25 = vector.shape_cast %24 : vector<4x16xf32> to vector<4x1x16xf32>
    %26 = vector.broadcast %25 : vector<4x1x16xf32> to vector<4x16x16xf32>
    %27 = arith.mulf %22, %26 : vector<4x16x16xf32>
    %cst_17 = arith.constant dense<0.000000e+00> : vector<4x16xf32>
    %28 = vector.multi_reduction <add>, %27, %cst_17 [2] : vector<4x16x16xf32> to vector<4x16xf32>
    %cst_18 = arith.constant 0xFF800000 : f32
    %29 = vector.broadcast %cst_18 : f32 to vector<4x16xf32>
    %30 = arith.select %21, %28, %29 : vector<4x16xi1>, vector<4x16xf32>
    %cst_19 = arith.constant dense<0xFF800000> : vector<4xf32>
    %31 = vector.multi_reduction <maximumf>, %30, %cst_19 [1] : vector<4x16xf32> to vector<4xf32>
    %32 = vector.shape_cast %31 : vector<4xf32> to vector<4x1xf32>
    %33 = vector.broadcast %32 : vector<4x1xf32> to vector<4x16xf32>
    %34 = arith.subf %30, %33 : vector<4x16xf32>
    %35 = math.exp %34 : vector<4x16xf32>
    %cst_20 = arith.constant dense<0.000000e+00> : vector<4xf32>
    %36 = vector.multi_reduction <add>, %35, %cst_20 [1] : vector<4x16xf32> to vector<4xf32>
    %37 = vector.shape_cast %36 : vector<4xf32> to vector<4x1xf32>
    %38 = vector.broadcast %37 : vector<4x1xf32> to vector<4x16xf32>
    %39 = arith.divf %35, %38 : vector<4x16xf32>
    %c0_21 = arith.constant 0 : index
    %c0_22 = arith.constant 0 : index
    %c0_23 = arith.constant 0 : index
    %40 = vector.load %arg10[%c0_21, %c0_22, %c0_23] : memref<2x4x16xf32, #tpu.memory_space<vmem>>, vector<1x4x16xf32>
    %41 = vector.shape_cast %40 : vector<1x4x16xf32> to vector<4x16xf32>
    %42 = vector.shape_cast %39 : vector<4x16xf32> to vector<1x4x16xf32>
    tpu.vector_store %arg10[%c0_21, %c0_22, %c0_23], %42 {strides = array<i32>} : memref<2x4x16xf32, #tpu.memory_space<vmem>>, vector<1x4x16xf32>,
    %43 = vector.shape_cast %39 : vector<4x16xf32> to vector<4x16x1xf32>
    %44 = vector.broadcast %43 : vector<4x16x1xf32> to vector<4x16x24xf32>
    %45 = arith.mulf %23, %44 : vector<4x16x24xf32>
    %cst_24 = arith.constant dense<0.000000e+00> : vector<4x24xf32>
    %46 = vector.multi_reduction <add>, %45, %cst_24 [1] : vector<4x16x24xf32> to vector<4x24xf32>
    %c0_25 = arith.constant 0 : index
    %c0_26 = arith.constant 0 : index
    %47 = vector.load %arg11[%c0_25, %c0_26] : memref<4x48xf32, #tpu.memory_space<vmem>>, vector<4x24xf32>
    tpu.vector_store %arg11[%c0_25, %c0_26], %46 {strides = array<i32>} : memref<4x48xf32, #tpu.memory_space<vmem>>, vector<4x24xf32>,
    %48 = vector.extract_strided_slice %16 {offsets = [0, 0, 16], sizes = [4, 16, 16], strides = [1, 1, 1]} : vector<4x16x32xf32> to vector<4x16x16xf32>
    %49 = vector.extract_strided_slice %17 {offsets = [0, 0, 24], sizes = [4, 16, 24], strides = [1, 1, 1]} : vector<4x16x48xf32> to vector<4x16x24xf32>
    %50 = vector.extract_strided_slice %15 {offsets = [0, 16], sizes = [4, 16], strides = [1, 1]} : vector<4x32xf32> to vector<4x16xf32>
    %51 = vector.shape_cast %50 : vector<4x16xf32> to vector<4x1x16xf32>
    %52 = vector.broadcast %51 : vector<4x1x16xf32> to vector<4x16x16xf32>
    %53 = arith.mulf %48, %52 : vector<4x16x16xf32>
    %cst_27 = arith.constant dense<0.000000e+00> : vector<4x16xf32>
    %54 = vector.multi_reduction <add>, %53, %cst_27 [2] : vector<4x16x16xf32> to vector<4x16xf32>
    %cst_28 = arith.constant 0xFF800000 : f32
    %55 = vector.broadcast %cst_28 : f32 to vector<4x16xf32>
    %56 = arith.select %21, %54, %55 : vector<4x16xi1>, vector<4x16xf32>
    %cst_29 = arith.constant dense<0xFF800000> : vector<4xf32>
    %57 = vector.multi_reduction <maximumf>, %56, %cst_29 [1] : vector<4x16xf32> to vector<4xf32>
    %58 = vector.shape_cast %57 : vector<4xf32> to vector<4x1xf32>
    %59 = vector.broadcast %58 : vector<4x1xf32> to vector<4x16xf32>
    %60 = arith.subf %56, %59 : vector<4x16xf32>
    %61 = math.exp %60 : vector<4x16xf32>
    %cst_30 = arith.constant dense<0.000000e+00> : vector<4xf32>
    %62 = vector.multi_reduction <add>, %61, %cst_30 [1] : vector<4x16xf32> to vector<4xf32>
    %63 = vector.shape_cast %62 : vector<4xf32> to vector<4x1xf32>
    %64 = vector.broadcast %63 : vector<4x1xf32> to vector<4x16xf32>
    %65 = arith.divf %61, %64 : vector<4x16xf32>
    %c1 = arith.constant 1 : index
    %c0_31 = arith.constant 0 : index
    %c0_32 = arith.constant 0 : index
    %66 = vector.load %arg10[%c1, %c0_31, %c0_32] : memref<2x4x16xf32, #tpu.memory_space<vmem>>, vector<1x4x16xf32>
    %67 = vector.shape_cast %66 : vector<1x4x16xf32> to vector<4x16xf32>
    %68 = vector.shape_cast %65 : vector<4x16xf32> to vector<1x4x16xf32>
    tpu.vector_store %arg10[%c1, %c0_31, %c0_32], %68 {strides = array<i32>} : memref<2x4x16xf32, #tpu.memory_space<vmem>>, vector<1x4x16xf32>,
    %69 = vector.shape_cast %65 : vector<4x16xf32> to vector<4x16x1xf32>
    %70 = vector.broadcast %69 : vector<4x16x1xf32> to vector<4x16x24xf32>
    %71 = arith.mulf %49, %70 : vector<4x16x24xf32>
    %cst_33 = arith.constant dense<0.000000e+00> : vector<4x24xf32>
    %72 = vector.multi_reduction <add>, %71, %cst_33 [1] : vector<4x16x24xf32> to vector<4x24xf32>
    %c0_34 = arith.constant 0 : index
    %c24 = arith.constant 24 : index
    %73 = vector.load %arg11[%c0_34, %c24] : memref<4x48xf32, #tpu.memory_space<vmem>>, vector<4x24xf32>
    tpu.vector_store %arg11[%c0_34, %c24], %72 {strides = array<i32>} : memref<4x48xf32, #tpu.memory_space<vmem>>, vector<4x24xf32>,
    %c0_35 = arith.constant 0 : index
    %c0_36 = arith.constant 0 : index
    %74 = vector.load %arg11[%c0_35, %c0_36] : memref<4x48xf32, #tpu.memory_space<vmem>>, vector<4x48xf32>
    %c0_37 = arith.constant 0 : index
    %c0_38 = arith.constant 0 : index
    %75 = vector.load %arg8[%c0_37, %c0_38] : memref<48x32xf32, #tpu.memory_space<vmem>>, vector<48x32xf32>
    %cst_39 = arith.constant dense<0.000000e+00> : vector<4x32xf32>
    %76 = tpu.matmul %74, %75, %cst_39 {dimension_numbers = #tpu.dot_dimension_numbers<[1], [0], [0], [1], [0, 0, 1, 1], [], []>} : vector<4x48xf32>, vector<48x32xf32>, vector<4x32xf32> -> vector<4x32xf32>
    %c0_40 = arith.constant 0 : index
    %c0_41 = arith.constant 0 : index
    %77 = vector.load %arg9[%c0_40, %c0_41] : memref<4x32xf32, #tpu.memory_space<vmem>>, vector<4x32xf32>
    tpu.vector_store %arg9[%c0_40, %c0_41], %76 {strides = array<i32>} : memref<4x32xf32, #tpu.memory_space<vmem>>, vector<4x32xf32>,
    return
  }
  func.func @transform_0(%arg0: i32) -> (i32, i32) {
    %c0_i32 = arith.constant 0 : i32
    %c0_i32_0 = arith.constant 0 : i32
    return %arg0, %c0_i32 : i32, i32
  }
  func.func @transform_1(%arg0: i32) -> (i32, i32, i32) {
    %c0_i32 = arith.constant 0 : i32
    %c0_i32_0 = arith.constant 0 : i32
    %c0_i32_1 = arith.constant 0 : i32
    return %arg0, %c0_i32, %c0_i32_0 : i32, i32, i32
  }
  func.func @transform_2(%arg0: i32) -> (i32, i32) {
    %c0_i32 = arith.constant 0 : i32
    %c0_i32_0 = arith.constant 0 : i32
    return %arg0, %c0_i32 : i32, i32
  }
  func.func @transform_3(%arg0: i32) -> (i32, i32) {
    %c0_i32 = arith.constant 0 : i32
    %c0_i32_0 = arith.constant 0 : i32
    %c0_i32_1 = arith.constant 0 : i32
    return %c0_i32, %c0_i32_0 : i32, i32
  }
  func.func @transform_4(%arg0: i32) -> (i32, i32) {
    %c0_i32 = arith.constant 0 : i32
    %c0_i32_0 = arith.constant 0 : i32
    %c0_i32_1 = arith.constant 0 : i32
    return %c0_i32, %c0_i32_0 : i32, i32
  }
  func.func @transform_5(%arg0: i32) -> (i32, i32) {
    %c0_i32 = arith.constant 0 : i32
    %c0_i32_0 = arith.constant 0 : i32
    %c0_i32_1 = arith.constant 0 : i32
    return %c0_i32, %c0_i32_0 : i32, i32
  }
  func.func @transform_6(%arg0: i32) -> (i32, i32) {
    %c0_i32 = arith.constant 0 : i32
    %c0_i32_0 = arith.constant 0 : i32
    %c0_i32_1 = arith.constant 0 : i32
    return %c0_i32, %c0_i32_0 : i32, i32
  }
  func.func @transform_7(%arg0: i32) -> (i32, i32) {
    %c0_i32 = arith.constant 0 : i32
    %c0_i32_0 = arith.constant 0 : i32
    %c0_i32_1 = arith.constant 0 : i32
    return %c0_i32, %c0_i32_0 : i32, i32
  }
  func.func @transform_8(%arg0: i32) -> (i32, i32) {
    %c0_i32 = arith.constant 0 : i32
    %c0_i32_0 = arith.constant 0 : i32
    return %arg0, %c0_i32 : i32, i32
  }
  func.func @transform_9(%arg0: i32) -> (i32, i32, i32) {
    %c0_i32 = arith.constant 0 : i32
    %c0_i32_0 = arith.constant 0 : i32
    %c0_i32_1 = arith.constant 0 : i32
    return %c0_i32, %arg0, %c0_i32_0 : i32, i32, i32
  }
}

</mosaic_0001>

<bundles_post_ra>
// kernel: tpu_custom_call.1
= control target key start
LH: loop header
LB: loop body
LE: loop exit
PB: predicated region body
PF: predicated region fallthrough
CT: control target
= control target key end

     0   :  { %15 = vsyncpa [#allocation4], 0  ;;  %vm46_vm0 = vcmask 261120   ;;  %s1588_s0 = inlined_call_operand.vmem [shape: s32[4,1], index: 0, kind: input, shape index: {}]   ;;  %s1589_s1 = inlined_call_operand.vmem [shape: f32[4,16,32], index: 1, kind: input, shape index: {}]   ;;  %s1590_s2 = inlined_call_operand.vmem [shape: f32[4,48], index: 2, kind: input, shape index: {}]   ;;  %s1591_s3 = inlined_call_operand.vmem [shape: f32[32,32], index: 3, kind: input, shape index: {}]   ;;  %s1592_s4 = inlined_call_operand.vmem [shape: f32[32,48], index: 4, kind: input, shape index: {}]   ;;  %s1593_s5 = inlined_call_operand.vmem [shape: f32[48,32], index: 5, kind: input, shape index: {}]   ;;  %s1594_s6 = inlined_call_operand.vmem [shape: f32[1,32], index: 6, kind: input, shape index: {}]   ;;  %s1595_s7 = inlined_call_operand.vmem [shape: f32[48,32], index: 7, kind: input, shape index: {}]   ;;  %s1596_s8 = inlined_call_operand.hbm [shape: f32[4,32], index: 8, kind: output, shape index: {0}]   ;;  %s1597_s9 = inlined_call_operand.hbm [shape: f32[2,4,16], index: 9, kind: output, shape index: {1}]  }
   0x1   :  { %v42_v0 = vld [vmem:[%s1591_s3] sm:$0xff]  ;;  %v43_v1 = vld [vmem:[%s1591_s3 + $0x8] sm:$0xff]  ;;  %v44_v2 = vld [vmem:[%s1591_s3 + $0x10] sm:$0xff] }
   0x2   :  { %v1089_v3 = vpack.c.bf16 %v43_v1, %v42_v0  ;;  %v45_v4 = vld [vmem:[%s1591_s3 + $0x18] sm:$0xff]  ;;  %v33_v5 = vld [vmem:[%s1589_s1] sm:$0xff]  ;;  %v294_v8 = vld [vmem:[%s1593_s5 + $0x8] sm:$0xff] }
   0x3   :  { %v1093_v6 = vpack.c.bf16 %v45_v4, %v44_v2  ;;  %1027 = vmatprep.mubr.msk.f32.mxu0 %vm46_vm0, %v33_v5  ;;  %1047 = vmatprep.mubr.msk.f32.mxu1 %vm46_vm0, %v33_v5  ;;  %v293_v7 = vld [vmem:[%s1593_s5] sm:$0xff] }
   0x4   :  { %1090 = vmatprep.subr.bf16.mxu0 %v1089_v3 }
   0x5   :  { %1092 = vmatpush3.bf16.msra.mxu0 %v1089_v3 }
   0x6   :  { %1094 = vmatprep.subr.bf16.mxu0 %v1093_v6 }
   0x7   :  { %16 = vsyncpa [#allocation6], 0  ;;  %v1295_v9 = vld [vmem:[%s1589_s1 + $0x8] sm:$0xff]  ;;  %v1106_v10 = vpack.c.bf16 %v294_v8, %v293_v7  ;;  %v1209_v11 = vmov 0.0|0.0   ;;  %v1301_v12 = vld [vmem:[%s1589_s1 + $0x10] sm:$0xff]  ;;  %vm1210_vm1 = vmmov 0   ;;  %v382_v38 = vlaneseq }
   0x8   :  { %v295_v13 = vld [vmem:[%s1593_s5 + $0x10] sm:$0xff]  ;;  %v296_v14 = vld [vmem:[%s1593_s5 + $0x18] sm:$0xff]  ;;  %v1322_v17 = vld [vmem:[%s1589_s1 + $0x20] sm:$0xff]  ;;  %v1211_v24 = vmov 0.0   ;;  %vm306_vm2 = vcmask 392192   ;;  %vm442_vm3 = vcmask 130048  }
   0x9   :  { %1096 = vmatpush3.bf16.msra.mxu0 %v1093_v6  ;;  %v1316_v15 = vld [vmem:[%s1589_s1 + $0x18] sm:$0xff]  ;;  %v1109_v16 = vpack.c.bf16 %v296_v14, %v295_v13  ;;  %v297_v18 = vld [vmem:[%s1593_s5 + $0x20] sm:$0xff]  ;;  %v298_v19 = vld [vmem:[%s1593_s5 + $0x28] sm:$0xff]  ;;  %v1212_v39 = vmov 1966171168   ;;  %v1366_v42 = vshrl.u32 %v382_v38, 7 }
   0xa   :  { %1105 = vmatprep.subr.bf16.mxu0 %v1209_v11  ;;  %v1337_v20 = vld [vmem:[%s1589_s1 + $0x28] sm:$0xff]  ;;  %v1112_v21 = vpack.c.bf16 %v298_v19, %v297_v18  ;;  %v1342_v22 = vld [vmem:[%s1589_s1 + $0x30] sm:$0xff]  ;;  %v1352_v23 = vld [vmem:[%s1589_s1 + $0x38] sm:$0xff]  ;;  %v391_v40 = vunpack.c.l.s4 %v1212_v39  ;;  %vm484_vm4 = vcmask 130112   ;;  %vm513_vm5 = vcmask 1041409  }
   0xb   :  { %v41_v25 = vld [vmem:[%s1590_s2] sm:$0xf]  ;;  %v1370_v47 = vsub.s32 0, %v1366_v42  ;;  %s1213_s2 = smov 112   ;;  %vm515_vm6 = vcmask 1042434   ;;  %vm517_vm7 = vcmask 1043459  }
   0xc   :  { %1028 = vmatmul.mubr.msk.f32.vlgmr.msra.gmra.mrb[0].mxu0 %vm46_vm0, %v1295_v9  ;;  %v978_v34 = vld [vmem:[%s1594_s6] ss:$0 sm:$0xff]  ;;  %v392_v41 = vunpack.c.0.s8 %v391_v40  ;;  %vm521_vm8 = vcmask 125952   ;;  %vm586_vm10 = vcmask 195584   ;;  %vm631_vm11 = vcmask 191488  }
   0xd   :  { %1107 = vmatpush3.bf16.msra.mxu0 %v1106_v10  ;;  %1030 = vmatprep.mubr.msk.f32.mxu0 %vm46_vm0, %v1301_v12  ;;  %v1214_v10 = vmov 0   ;;  %vm803_vm12 = vcmask 392384   ;;  %vm848_vm13 = vcmask 388288  }
   0xe   :  { %1108 = vmatprep.subr.bf16.mxu0 %v1209_v11  ;;  %v395_v43 = vsub.s32 %v392_v41, %v1366_v42  ;;  %1134 = vset.pattern.permute.xlu0 %v1214_v10 }
   0xf   :  { %1133 = vset.pattern.permute.xlu1 %v1214_v10 }
  0x10   :  { %1031 = vmatmul.mubr.msk.f32.gmra.mrb[2].mxu0 %vm46_vm0, %v1316_v15 }
  0x11   :  { %1033 = vmatprep.mubr.msk.f32.mxu0 %vm46_vm0, %v1322_v17  ;;  %1110 = vmatpush3.bf16.msra.mxu0 %v1109_v16 }
  0x12   :  { %1111 = vmatprep.subr.bf16.mxu0 %v1209_v11 }
  0x14   :  { %1034 = vmatmul.mubr.msk.f32.gmra.mrb[4].mxu0 %vm46_vm0, %v1337_v20 }
  0x15   :  { %1036 = vmatprep.mubr.msk.f32.mxu0 %vm46_vm0, %v1342_v22  ;;  %1113 = vmatpush3.bf16.msra.mxu0 %v1112_v21 }
  0x18   :  { %1037 = vmatmul.mubr.msk.f32.gmra.mrb[6].mxu0 %vm46_vm0, %v1352_v23 }
  0x19   :  { %1071 = vmatprep.mubr.msk.f32.mxu0 %vm1210_vm1, %v1211_v24 }
  0x1c   :  { %1072 = vmatmul.mubr.msk.f32.vlgmr.msra.gmra.mrb[8].mxu0 %vm306_vm2, %v41_v25 }
  0xdf   :  { %v1029_v26 = vpop.f32.mrb[0].mxu0 }
  0xe0   :  { %v137_v27 = vpop.f32.mrb[1].mxu0 }
  0xe3   :  { %v1032_v28 = vpop.f32.mrb[2].mxu0 }
  0xe4   :  { %v147_v29 = vpop.f32.mrb[3].mxu0 }
  0xe7   :  { %v1035_v30 = vpop.f32.mrb[4].mxu0 }
  0xe8   :  { %v157_v31 = vpop.f32.mrb[5].mxu0 }
  0xeb   :  { %v1038_v32 = vpop.f32.mrb[6].mxu0 }
  0xec   :  { %v167_v33 = vpop.f32.mrb[7].mxu0 }
  0xef   :  { %v376_v35 = vpop.f32.mrb[8].mxu0 }
  0xf0   :  { %v377_v36 = vadd.f32 %v978_v34, %v376_v35  ;;  %v1073_v37 = vpop.f32.mrb[9].mxu0 }
  0xf2   :  { %1135 = vtanh.f32 %v377_v36 }
  0xf3   :  { %1137 = vtanh.f32 %v1029_v26 }
  0xf4   :  { %1139 = vtanh.f32 %v137_v27 }
  0xf5   :  { %1141 = vtanh.f32 %v1032_v28 }
  0xf6   :  { %1143 = vtanh.f32 %v147_v29 }
  0xf7   :  { %1145 = vtanh.f32 %v1035_v30 }
  0xf8   :  { %1147 = vtanh.f32 %v157_v31 }
  0xf9   :  { %1149 = vtanh.f32 %v1038_v32 }
  0xfa   :  { %1151 = vtanh.f32 %v167_v33 }
  0xfc   :  { %v1136_v44 = vpop.eup %1135 }
  0xfd   :  { %v381_v45 = vmul.f32 0.25, %v1136_v44  ;;  %v1138_v48 = vpop.eup %1137  ;;  %v1403_v44 = vand.u32 127, %v382_v38 }
  0xfe   :  { %v1140_v51 = vpop.eup %1139 }
  0xff   :  { %v396_v46 = vrot.slane %v381_v45, %v395_v43  ;;  %v1142_v52 = vpop.eup %1141 }
 0x100   :  { %v1144_v56 = vpop.eup %1143 }
 0x101   :  { %v404_v49 = vrot.slane %v396_v46, %v395_v43  ;;  %v397_v50 = vcombine.high %v396_v46, %v396_v46  ;;  %v1146_v57 = vpop.eup %1145  ;;  %v479_v46 = vadd.s32 4294967288, %v1403_v44 }
 0x102   :  { %v1148_v62 = vpop.eup %1147 }
 0x103   :  { %v417_v53 = vrot.slane %v404_v49, %v1370_v47  ;;  %v412_v54 = vcombine.high %v404_v49, %v404_v49  ;;  %v411_v55 = vrot.slane %v397_v50, %v395_v43  ;;  %v1150_v0 = vpop.eup %1149  ;;  %v384_v43 = vld [vmem:[%s1588_s0] sm:$0xf]  ;;  %v1407_v50 = vsub.s32 %v479_v46, %v1366_v42  ;;  %v187_v46 = vld [vmem:[%s1592_s4 + $0x18] sm:$0xff] }
 0x104   :  { %v1152_v4 = vpop.eup %1151 }
 0x105   :  { %v434_v58 = vmul.f32 %v1140_v51, %v417_v53  ;;  %v421_v59 = vrot.slane %v411_v55, %v1370_v47  ;;  %v413_v60 = vcombine.high %v411_v55, %v411_v55  ;;  %v435_v61 = vmul.f32 %v1138_v48, %v417_v53 }
 0x106   :  { %v425_v63 = vrot.slane %v412_v54, %v1370_v47 }
 0x107   :  { %641 = vrot.lane.b32.xlu0 %v434_v58, %s1213_s2  ;;  %v436_v1 = vmul.f32 %v1144_v56, %v421_v59  ;;  %v437_v2 = vmul.f32 %v1142_v52, %v421_v59  ;;  %v429_v3 = vrot.slane %v413_v60, %v1370_v47  ;;  %v443_v13 = vsel %vm442_vm3, %v434_v58, 0.0 }
 0x108   :  { %v438_v5 = vmul.f32 %v1148_v62, %v425_v63  ;;  %v439_v6 = vmul.f32 %v1146_v57, %v425_v63  ;;  %v446_v14 = vsel %vm442_vm3, %v435_v61, 0.0  ;;  %v1411_v52 = vsub.s32 %v1403_v44, %v1366_v42 }
 0x109   :  { %645 = vrot.lane.b32.xlu1 %v436_v1, %s1213_s2  ;;  %v440_v7 = vmul.f32 %v1152_v4, %v429_v3  ;;  %v441_v8 = vmul.f32 %v1150_v0, %v429_v3  ;;  %v449_v16 = vsel %vm442_vm3, %v436_v1, 0.0  ;;  %v452_v19 = vsel %vm442_vm3, %v437_v2, 0.0 }
 0x10a   :  { %v455_v18 = vsel %vm442_vm3, %v438_v5, 0.0  ;;  %v458_v21 = vsel %vm442_vm3, %v439_v6, 0.0 }
 0x10b   :  { %643 = vrot.lane.b32.xlu0 %v435_v61, %s1213_s2  ;;  %v464_v25 = vsel %vm442_vm3, %v441_v8, 0.0  ;;  %v461_v26 = vsel %vm442_vm3, %v440_v7, 0.0 }
 0x10d   :  { %647 = vrot.lane.b32.xlu1 %v437_v2, %s1213_s2 }
 0x10f   :  { %649 = vrot.lane.b32.xlu0 %v438_v5, %s1213_s2 }
 0x111   :  { %651 = vrot.lane.b32.xlu1 %v439_v6, %s1213_s2 }
 0x113   :  { %653 = vrot.lane.b32.xlu0 %v440_v7, %s1213_s2 }
 0x132   :  { %444 = vadd.xlane.f32.xlu0 %v443_v13 }
 0x135   :  { %447 = vadd.xlane.f32.xlu1 %v446_v14 }
 0x136   :  { %450 = vadd.xlane.f32.xlu0 %v449_v16 }
 0x139   :  { %456 = vadd.xlane.f32.xlu1 %v455_v18 }
 0x13a   :  { %453 = vadd.xlane.f32.xlu0 %v452_v19 }
 0x13e   :  { %459 = vadd.xlane.f32.xlu0 %v458_v21 }
 0x142   :  { %465 = vadd.xlane.f32.xlu0 %v464_v25 }
 0x14a   :  { %655 = vrot.lane.b32.xlu1 %v441_v8, %s1213_s2 }
 0x16e   :  { %462 = vadd.xlane.f32.xlu1 %v461_v26 }
 0x179   :  { %v642_v27 = vpop.permute.xlu0 %641 }
 0x17a   :  { %v665_v28 = vsel %vm442_vm3, %v642_v27, 0.0 }
 0x17b   :  { %v646_v29 = vpop.permute.xlu1 %645  ;;  %666 = vadd.xlane.f32.xlu1 %v665_v28 }
 0x17c   :  { %v671_v32 = vsel %vm442_vm3, %v646_v29, 0.0 }
 0x17d   :  { %v644_v30 = vpop.permute.xlu0 %643 }
 0x17e   :  { %v668_v31 = vsel %vm442_vm3, %v644_v30, 0.0 }
 0x17f   :  { %v648_v33 = vpop.permute.xlu1 %647  ;;  %669 = vadd.xlane.f32.xlu0 %v668_v31  ;;  %672 = vadd.xlane.f32.xlu1 %v671_v32 }
 0x180   :  { %v674_v35 = vsel %vm442_vm3, %v648_v33, 0.0 }
 0x181   :  { %v650_v34 = vpop.permute.xlu0 %649 }
 0x182   :  { %v677_v36 = vsel %vm442_vm3, %v650_v34, 0.0 }
 0x183   :  { %v652_v37 = vpop.permute.xlu1 %651  ;;  %675 = vadd.xlane.f32.xlu0 %v674_v35  ;;  %678 = vadd.xlane.f32.xlu1 %v677_v36 }
 0x184   :  { %v680_v40 = vsel %vm442_vm3, %v652_v37, 0.0 }
 0x185   :  { %v654_v39 = vpop.permute.xlu0 %653 }
 0x186   :  { %v683_v41 = vsel %vm442_vm3, %v654_v39, 0.0 }
 0x187   :  { %681 = vadd.xlane.f32.xlu0 %v680_v40  ;;  %684 = vadd.xlane.f32.xlu1 %v683_v41  ;;  %v184_v40 = vld [vmem:[%s1592_s4] sm:$0xff]  ;;  %v185_v41 = vld [vmem:[%s1592_s4 + $0x8] sm:$0xff] }
 0x198   :  { %386 = vperm.xlu1 %1133, %v384_v43   ;;  %v186_v43 = vld [vmem:[%s1592_s4 + $0x10] sm:$0xff] }
 0x1bf   :  { %v445_v45 = vpop.xlane.xlu0 %444 }
 0x1c0   :  { %v478_v57 = vrot.slane %v445_v45, %v1411_v52  ;;  %v1097_v45 = vpack.c.bf16 %v185_v41, %v184_v40 }
 0x1c2   :  { %v448_v48 = vpop.xlane.xlu1 %447  ;;  %1098 = vmatprep.subr.bf16.mxu1 %v1097_v45 }
 0x1c3   :  { %v451_v49 = vpop.xlane.xlu0 %450  ;;  %v483_v55 = vrot.slane %v448_v48, %v1407_v50  ;;  %v1101_v48 = vpack.c.bf16 %v187_v46, %v186_v43  ;;  %1100 = vmatpush3.bf16.msra.mxu1 %v1097_v45 }
 0x1c4   :  { %v489_v38 = vrot.slane %v451_v49, %v1411_v52 }
 0x1c5   :  { %v485_v63 = vsel %vm484_vm4, %v483_v55, %v478_v57  ;;  %1102 = vmatprep.subr.bf16.mxu1 %v1101_v48 }
 0x1c6   :  { %v457_v51 = vpop.xlane.xlu1 %456 }
 0x1c7   :  { %v454_v53 = vpop.xlane.xlu0 %453  ;;  %v498_v61 = vrot.slane %v457_v51, %v1411_v52  ;;  %1104 = vmatpush3.bf16.msra.mxu1 %v1101_v48 }
 0x1c8   :  { %v493_v54 = vrot.slane %v454_v53, %v1407_v50  ;;  %1114 = vmatprep.subr.bf16.mxu1 %v1209_v11 }
 0x1ca   :  { %v656_v56 = vpop.permute.xlu1 %655  ;;  %v494_v58 = vsel %vm484_vm4, %v493_v54, %v489_v38  ;;  %1048 = vmatmul.mubr.msk.f32.vlgmr.msra.gmra.mrb[0].mxu1 %vm46_vm0, %v1295_v9 }
 0x1cb   :  { %v460_v59 = vpop.xlane.xlu0 %459  ;;  %v686_v60 = vsel %vm442_vm3, %v656_v56, 0.0  ;;  %v514_v1 = vsel %vm513_vm5, %v494_v58, %v485_v63  ;;  %1050 = vmatprep.mubr.msk.f32.mxu1 %vm46_vm0, %v1301_v12 }
 0x1cc   :  { %v502_v62 = vrot.slane %v460_v59, %v1407_v50  ;;  %687 = vadd.xlane.f32.xlu0 %v686_v60 }
 0x1ce   :  { %v503_v0 = vsel %vm484_vm4, %v502_v62, %v498_v61  ;;  %1051 = vmatmul.mubr.msk.f32.gmra.mrb[2].mxu1 %vm46_vm0, %v1316_v15 }
 0x1cf   :  { %v516_v2 = vsel %vm515_vm6, %v503_v0, %v514_v1  ;;  %v466_v4 = vpop.xlane.xlu0 %465  ;;  %1053 = vmatprep.mubr.msk.f32.mxu1 %vm46_vm0, %v1322_v17 }
 0x1d0   :  { %v511_v26 = vrot.slane %v466_v4, %v1407_v50  ;;  %v547_v4 = vsub.s32 1, %v1366_v42 }
 0x1d2   :  { %1054 = vmatmul.mubr.msk.f32.gmra.mrb[4].mxu1 %vm46_vm0, %v1337_v20 }
 0x1d3   :  { %1056 = vmatprep.mubr.msk.f32.mxu1 %vm46_vm0, %v1342_v22 }
 0x1d6   :  { %1057 = vmatmul.mubr.msk.f32.gmra.mrb[6].mxu1 %vm46_vm0, %v1352_v23 }
 0x1d7   :  { %1086 = vmatprep.mubr.msk.f32.mxu1 %vm1210_vm1, %v1211_v24 }
 0x1fb   :  { %v463_v3 = vpop.xlane.xlu1 %462 }
 0x1fc   :  { %v507_v19 = vrot.slane %v463_v3, %v1411_v52  ;;  %v569_v3 = vsub.s32 3, %v1366_v42 }
 0x1fe   :  { %v512_v32 = vsel %vm484_vm4, %v511_v26, %v507_v19  ;;  %v852_v26 = vld [vmem:[%s1595_s7 + $0x8] sm:$0xff] }
 0x1ff   :  { %v518_v36 = vsel %vm517_vm7, %v512_v32, %v516_v2 }
 0x208   :  { %v667_v5 = vpop.xlane.xlu1 %666 }
 0x209   :  { %v700_v14 = vrot.slane %v667_v5, %v1411_v52 }
 0x20c   :  { %v670_v6 = vpop.xlane.xlu0 %669  ;;  %v673_v7 = vpop.xlane.xlu1 %672 }
 0x20d   :  { %v704_v8 = vrot.slane %v670_v6, %v1407_v50  ;;  %v709_v16 = vrot.slane %v673_v7, %v1411_v52  ;;  %v558_v7 = vsub.s32 2, %v1366_v42 }
 0x20f   :  { %v705_v21 = vsel %vm484_vm4, %v704_v8, %v700_v14 }
 0x210   :  { %v676_v10 = vpop.xlane.xlu0 %675  ;;  %v679_v13 = vpop.xlane.xlu1 %678 }
 0x211   :  { %v713_v18 = vrot.slane %v676_v10, %v1407_v50  ;;  %v718_v30 = vrot.slane %v679_v13, %v1411_v52 }
 0x213   :  { %v714_v25 = vsel %vm484_vm4, %v713_v18, %v709_v16 }
 0x214   :  { %v682_v27 = vpop.xlane.xlu0 %681  ;;  %v685_v28 = vpop.xlane.xlu1 %684  ;;  %v733_v29 = vsel %vm513_vm5, %v714_v25, %v705_v21  ;;  %v851_v25 = vld [vmem:[%s1595_s7] sm:$0xff] }
 0x215   :  { %v722_v31 = vrot.slane %v682_v27, %v1407_v50  ;;  %v727_v12 = vrot.slane %v685_v28, %v1411_v52  ;;  %v853_v27 = vld [vmem:[%s1595_s7 + $0x10] sm:$0xff]  ;;  %v854_v28 = vld [vmem:[%s1595_s7 + $0x18] sm:$0xff] }
 0x217   :  { %v723_v33 = vsel %vm484_vm4, %v722_v31, %v718_v30  ;;  %v855_v30 = vld [vmem:[%s1595_s7 + $0x20] sm:$0xff]  ;;  %v856_v31 = vld [vmem:[%s1595_s7 + $0x28] sm:$0xff]  ;;  %s1215_s7 = smov [#allocation5]  }
 0x218   :  { %v387_v34 = vpop.permute.xlu1 %386  ;;  %v734_v35 = vsel %vm515_vm6, %v723_v33, %v733_v29  ;;  %v1118_v29 = vpack.c.bf16 %v854_v28, %v853_v27  ;;  %v1121_v32 = vpack.c.bf16 %v856_v31, %v855_v30  ;;  %s947_s21 = sshll.u32 %s1215_s7, 4  ;;  %s948_s21 = int_to_ptr.vmem [resolvable:$true] %s947_s21 }
 0x219   :  { %vm388_vm9 = vcmp.lt.s32.totalorder %v1403_v44, %v387_v34  ;;  %s1161_s22 = scalar_lea.vmem %s948_s21, 128  ;;  %p1166_p1 = scmp.lt.s32.totalorder %s948_s21, %s948_s21 }
 0x21a   :  { %v520_v37 = vsel %vm388_vm9, %v518_v36, -inf  ;;  %p1162_p0 = scmp.ne.s32.totalorder %s948_s21, %s1161_s22  ;;  %p1167_p2 = scmp.lt.s32.totalorder %s1161_s22, %s1161_s22 }
 0x21b   :  { %v522_v39 = vsel %vm521_vm8, %v520_v37, -inf }
 0x21c   :  { %523 = vmax.xlane.f32.xlu0 %v522_v39  ;;  %p1168_p3 = por %p1167_p2, %p1166_p1 }
 0x21e   :  { %p1169_p4 = pnand %p1168_p3, %p1162_p0 }
 0x259   :  { %v688_v9 = vpop.xlane.xlu0 %687 }
 0x25a   :  { %v731_v15 = vrot.slane %v688_v9, %v1407_v50 }
 0x25c   :  { %v732_v49 = vsel %vm484_vm4, %v731_v15, %v727_v12 }
 0x25d   :  { %v735_v17 = vsel %vm517_vm7, %v732_v49, %v734_v35 }
 0x25e   :  { %v737_v20 = vsel %vm388_vm9, %v735_v17, -inf }
 0x25f   :  { %v738_v22 = vsel %vm521_vm8, %v737_v20, -inf }
 0x260   :  { %739 = vmax.xlane.f32.xlu0 %v738_v22 }
 0x29d   :  { %v1482_v44 = vpop.f32.mrb[0].mxu1 }
 0x29e   :  { %v1484_v57 = vpop.f32.mrb[1].mxu1 }
 0x2a1   :  { %v1486_v58 = vpop.f32.mrb[2].mxu1 }
 0x2a2   :  { %v1488_v60 = vpop.f32.mrb[3].mxu1 }
 0x2a5   :  { %v1490_v61 = vpop.f32.mrb[4].mxu1 }
 0x2a6   :  { %v1492_v62 = vpop.f32.mrb[5].mxu1 }
 0x2a9   :  { %v524_v51 = vpop.xlane.xlu0 %523  ;;  %v1494_v63 = vpop.f32.mrb[6].mxu1 }
 0x2aa   :  { %v525_v23 = vsub.f32 %v520_v37, %v524_v51  ;;  %v1501_v8 = vpop.f32.mrb[7].mxu1 }
 0x2ac   :  { %v526_v53 = vmul.f32 1.442695, %v525_v23 }
 0x2ae   :  { %1153 = vpow2.f32 %v526_v53 }
 0x2b8   :  { %v1154_v24 = vpop.eup %1153 }
 0x2b9   :  { %v528_v54 = vsel %vm521_vm8, %v1154_v24, 0.0 }
 0x2ba   :  { %529 = vadd.xlane.f32.xlu0 %v528_v54 }
 0x2ed   :  { %v740_v52 = vpop.xlane.xlu0 %739 }
 0x2ee   :  { %v741_v50 = vsub.f32 %v737_v20, %v740_v52 }
 0x2f0   :  { %v742_v55 = vmul.f32 1.442695, %v741_v50 }
 0x2f2   :  { %1155 = vpow2.f32 %v742_v55 }
 0x2fc   :  { %v1156_v38 = vpop.eup %1155 }
 0x2fd   :  { %v744_v56 = vsel %vm521_vm8, %v1156_v38, 0.0 }
 0x2fe   :  { %745 = vadd.xlane.f32.xlu0 %v744_v56 }
 0x347   :  { %v530_v59 = vpop.xlane.xlu0 %529 }
 0x348   :  { %1157 = vrcp.f32 %v530_v59 }
 0x352   :  { %v1158_v0 = vpop.eup %1157 }
 0x353   :  { %v532_v1 = vmul.f32 %v1158_v0, %v1154_v24 }
 0x355   :  { %533 = vst.msk [vmem:[#allocation5] sm:$0xf] %vm521_vm8, %v532_v1  ;;  %v537_v2 = vrot.slane %v532_v1, %v1370_v47  ;;  %v570_v5 = vrot.slane %v532_v1, %v569_v3  ;;  %v548_v6 = vrot.slane %v532_v1, %v547_v4  ;;  %v559_v10 = vrot.slane %v532_v1, %v558_v7 }
 0x357   :  { %543 = vbcast.lane.b32.xlu0 %v537_v2, 264  ;;  %539 = vbcast.lane.b32.xlu1 %v537_v2, 256 }
 0x35b   :  { %576 = vbcast.lane.b32.xlu0 %v570_v5, 264  ;;  %550 = vbcast.lane.b32.xlu1 %v548_v6, 256 }
 0x35f   :  { %554 = vbcast.lane.b32.xlu1 %v548_v6, 264 }
 0x363   :  { %561 = vbcast.lane.b32.xlu1 %v559_v10, 256 }
 0x367   :  { %565 = vbcast.lane.b32.xlu1 %v559_v10, 264 }
 0x36b   :  { %572 = vbcast.lane.b32.xlu1 %v570_v5, 256 }
 0x38b   :  { %v746_v13 = vpop.xlane.xlu0 %745 }
 0x38c   :  { %1159 = vrcp.f32 %v746_v13 }
 0x396   :  { %v1160_v14 = vpop.eup %1159 }
 0x397   :  { %v748_v16 = vmul.f32 %v1160_v14, %v1156_v38 }
 0x399   :  { %750 = vst.msk [vmem:[#allocation5 + $0x4] sm:$0xf] %vm521_vm8, %v748_v16  ;;  %v754_v18 = vrot.slane %v748_v16, %v1370_v47  ;;  %v765_v19 = vrot.slane %v748_v16, %v547_v4  ;;  %v776_v42 = vrot.slane %v748_v16, %v558_v7  ;;  %v787_v21 = vrot.slane %v748_v16, %v569_v3 }
 0x39a   :  { %v1115_v47 = vpack.c.bf16 %v852_v26, %v851_v25 }
 0x39b   :  { %760 = vbcast.lane.b32.xlu0 %v754_v18, 264  ;;  %756 = vbcast.lane.b32.xlu1 %v754_v18, 256 }
 0x39c   :  { %1116 = vmatpush3.bf16.msra.mxu1 %v1115_v47 }
 0x39d   :  { %1117 = vmatprep.subr.bf16.mxu1 %v1209_v11 }
 0x39f   :  { %771 = vbcast.lane.b32.xlu0 %v765_v19, 264  ;;  %767 = vbcast.lane.b32.xlu1 %v765_v19, 256 }
 0x3a0   :  { %1119 = vmatpush3.bf16.msra.mxu1 %v1118_v29 }
 0x3a1   :  { %1120 = vmatprep.subr.bf16.mxu1 %v1209_v11 }
 0x3a3   :  { %782 = vbcast.lane.b32.xlu0 %v776_v42, 264  ;;  %778 = vbcast.lane.b32.xlu1 %v776_v42, 256 }
 0x3a4   :  { %1122 = vmatpush3.bf16.msra.mxu1 %v1121_v32 }
 0x3a7   :  { %793 = vbcast.lane.b32.xlu0 %v787_v21, 264  ;;  %789 = vbcast.lane.b32.xlu1 %v787_v21, 256 }
 0x3c9   :  { %v540_v33 = vpop.permute.xlu1 %539  ;;  %v544_v34 = vpop.permute.xlu0 %543 }
 0x3ca   :  { %v578_v35 = vmul.f32 %v540_v33, %v1484_v57  ;;  %v579_v36 = vmul.f32 %v1482_v44, %v544_v34 }
 0x3cc   :  { %v587_v37 = vsel %vm586_vm10, %v578_v35, 0.0  ;;  %v588_v39 = vsel %vm586_vm10, %v579_v36, 0.0 }
 0x3cd   :  { %v589_v40 = vadd.f32 %v588_v39, %v587_v37  ;;  %v551_v41 = vpop.permute.xlu1 %550  ;;  %v577_v23 = vpop.permute.xlu0 %576 }
 0x3ce   :  { %v580_v45 = vmul.f32 %v551_v41, %v1488_v60  ;;  %v585_v50 = vmul.f32 %v1494_v63, %v577_v23 }
 0x3cf   :  { %v590_v43 = vrot.slane %v589_v40, 4 }
 0x3d0   :  { %v596_v9 = vsel %vm586_vm10, %v580_v45, 0.0  ;;  %v615_v5 = vsel %vm586_vm10, %v585_v50, 0.0 }
 0x3d1   :  { %v591_v46 = vadd.f32 %v590_v43, %v589_v40  ;;  %v555_v48 = vpop.permute.xlu1 %554 }
 0x3d2   :  { %v581_v11 = vmul.f32 %v1486_v58, %v555_v48 }
 0x3d3   :  { %v592_v15 = vrot.slane %v591_v46, 2 }
 0x3d4   :  { %v597_v12 = vsel %vm586_vm10, %v581_v11, 0.0 }
 0x3d5   :  { %v598_v49 = vadd.f32 %v597_v12, %v596_v9  ;;  %v562_v17 = vpop.permute.xlu1 %561  ;;  %v593_v51 = vadd.f32 %v592_v15, %v591_v46 }
 0x3d6   :  { %v582_v22 = vmul.f32 %v562_v17, %v1492_v62 }
 0x3d7   :  { %v599_v20 = vrot.slane %v598_v49, 4  ;;  %v594_v56 = vrot.slane %v593_v51, 1 }
 0x3d8   :  { %v605_v55 = vsel %vm586_vm10, %v582_v22, 0.0 }
 0x3d9   :  { %v600_v53 = vadd.f32 %v599_v20, %v598_v49  ;;  %v566_v24 = vpop.permute.xlu1 %565  ;;  %v595_v7 = vadd.f32 %v594_v56, %v593_v51 }
 0x3da   :  { %v583_v54 = vmul.f32 %v1490_v61, %v566_v24 }
 0x3db   :  { %v601_v52 = vrot.slane %v600_v53, 2 }
 0x3dc   :  { %v606_v38 = vsel %vm586_vm10, %v583_v54, 0.0 }
 0x3dd   :  { %v602_v59 = vadd.f32 %v601_v52, %v600_v53  ;;  %v607_v0 = vadd.f32 %v606_v38, %v605_v55  ;;  %v573_v1 = vpop.permute.xlu1 %572 }
 0x3de   :  { %v584_v2 = vmul.f32 %v573_v1, %v1501_v8 }
 0x3df   :  { %v603_v3 = vrot.slane %v602_v59, 1  ;;  %v608_v4 = vrot.slane %v607_v0, 4 }
 0x3e0   :  { %v614_v6 = vsel %vm586_vm10, %v584_v2, 0.0 }
 0x3e1   :  { %v604_v10 = vadd.f32 %v603_v3, %v602_v59  ;;  %v609_v13 = vadd.f32 %v608_v4, %v607_v0  ;;  %v616_v14 = vadd.f32 %v615_v5, %v614_v6 }
 0x3e3   :  { %v627_v16 = vsel %vm513_vm5, %v604_v10, %v595_v7  ;;  %v610_v18 = vrot.slane %v609_v13, 2  ;;  %v617_v19 = vrot.slane %v616_v14, 4 }
 0x3e5   :  { %v611_v42 = vadd.f32 %v610_v18, %v609_v13  ;;  %v618_v21 = vadd.f32 %v617_v19, %v616_v14 }
 0x3e7   :  { %v612_v25 = vrot.slane %v611_v42, 1  ;;  %v619_v26 = vrot.slane %v618_v21, 2 }
 0x3e9   :  { %v613_v47 = vadd.f32 %v612_v25, %v611_v42  ;;  %v620_v27 = vadd.f32 %v619_v26, %v618_v21 }
 0x3eb   :  { %v628_v28 = vsel %vm515_vm6, %v613_v47, %v627_v16  ;;  %v621_v29 = vrot.slane %v620_v27, 1 }
 0x3ed   :  { %v622_v30 = vadd.f32 %v621_v29, %v620_v27 }
 0x3ef   :  { %v629_v31 = vsel %vm517_vm7, %v622_v30, %v628_v28 }
 0x3f0   :  { %632 = vst.msk [vmem:[#allocation2] sm:$0xf] %vm631_vm11, %v629_v31 }
 0x40d   :  { %v757_v32 = vpop.permute.xlu1 %756  ;;  %v761_v33 = vpop.permute.xlu0 %760 }
 0x40e   :  { %v795_v34 = vmul.f32 %v757_v32, %v1484_v57  ;;  %v796_v35 = vmul.f32 %v1482_v44, %v761_v33 }
 0x410   :  { %v804_v36 = vsel %vm803_vm12, %v795_v34, 0.0  ;;  %v805_v37 = vsel %vm803_vm12, %v796_v35, 0.0 }
 0x411   :  { %v806_v39 = vadd.f32 %v805_v37, %v804_v36  ;;  %v768_v40 = vpop.permute.xlu1 %767  ;;  %v772_v41 = vpop.permute.xlu0 %771 }
 0x412   :  { %v797_v43 = vmul.f32 %v768_v40, %v1488_v60  ;;  %v798_v45 = vmul.f32 %v1486_v58, %v772_v41 }
 0x413   :  { %v807_v46 = vrot.slane %v806_v39, 4 }
 0x414   :  { %v813_v48 = vsel %vm803_vm12, %v797_v43, 0.0  ;;  %v814_v11 = vsel %vm803_vm12, %v798_v45, 0.0 }
 0x415   :  { %v808_v9 = vadd.f32 %v807_v46, %v806_v39  ;;  %v815_v57 = vadd.f32 %v814_v11, %v813_v48  ;;  %v779_v12 = vpop.permute.xlu1 %778  ;;  %v783_v44 = vpop.permute.xlu0 %782 }
 0x416   :  { %v799_v15 = vmul.f32 %v779_v12, %v1492_v62  ;;  %v800_v49 = vmul.f32 %v1490_v61, %v783_v44 }
 0x417   :  { %v809_v17 = vrot.slane %v808_v9, 2  ;;  %v816_v20 = vrot.slane %v815_v57, 4 }
 0x418   :  { %v822_v22 = vsel %vm803_vm12, %v799_v15, 0.0  ;;  %v823_v60 = vsel %vm803_vm12, %v800_v49, 0.0 }
 0x419   :  { %v810_v58 = vadd.f32 %v809_v17, %v808_v9  ;;  %v817_v51 = vadd.f32 %v816_v20, %v815_v57  ;;  %v824_v23 = vadd.f32 %v823_v60, %v822_v22  ;;  %v790_v53 = vpop.permute.xlu1 %789  ;;  %v794_v24 = vpop.permute.xlu0 %793 }
 0x41a   :  { %v801_v54 = vmul.f32 %v790_v53, %v1501_v8  ;;  %v802_v52 = vmul.f32 %v1494_v63, %v794_v24 }
 0x41b   :  { %v818_v50 = vrot.slane %v817_v51, 2  ;;  %v825_v55 = vrot.slane %v824_v23, 4  ;;  %v811_v38 = vrot.slane %v810_v58, 1 }
 0x41c   :  { %v831_v62 = vsel %vm803_vm12, %v801_v54, 0.0  ;;  %v832_v61 = vsel %vm803_vm12, %v802_v52, 0.0 }
 0x41d   :  { %v819_v56 = vadd.f32 %v818_v50, %v817_v51  ;;  %v826_v59 = vadd.f32 %v825_v55, %v824_v23  ;;  %v833_v0 = vadd.f32 %v832_v61, %v831_v62  ;;  %v812_v4 = vadd.f32 %v811_v38, %v810_v58 }
 0x41f   :  { %v820_v1 = vrot.slane %v819_v56, 1  ;;  %v827_v2 = vrot.slane %v826_v59, 2  ;;  %v834_v3 = vrot.slane %v833_v0, 4 }
 0x421   :  { %v821_v5 = vadd.f32 %v820_v1, %v819_v56  ;;  %v828_v6 = vadd.f32 %v827_v2, %v826_v59  ;;  %v835_v7 = vadd.f32 %v834_v3, %v833_v0 }
 0x423   :  { %v844_v8 = vsel %vm513_vm5, %v821_v5, %v812_v4  ;;  %v829_v63 = vrot.slane %v828_v6, 1  ;;  %v836_v10 = vrot.slane %v835_v7, 2 }
 0x425   :  { %v830_v13 = vadd.f32 %v829_v63, %v828_v6  ;;  %v837_v14 = vadd.f32 %v836_v10, %v835_v7 }
 0x427   :  { %v845_v16 = vsel %vm515_vm6, %v830_v13, %v844_v8  ;;  %v838_v18 = vrot.slane %v837_v14, 1 }
 0x429   :  { %v839_v19 = vadd.f32 %v838_v18, %v837_v14 }
 0x42b   :  { %v846_v42 = vsel %vm517_vm7, %v839_v19, %v845_v16 }
 0x42c   :  { %849 = vst.msk [vmem:[#allocation2] sm:$0xf] %vm848_vm13, %v846_v42 }
 0x433   :  { %v850_v21 = vld [vmem:[#allocation2] sm:$0xf] }
 0x434   :  { %1087 = vmatmul.mubr.msk.f32.vlgmr.msra.gmra.mrb[8].mxu1 %vm306_vm2, %v850_v21 }
 0x435   :  { %1172 = shalt.err (!%p1169_p4)
}
 0x436   :  { %s1173_s23 = scalar_lea.hbm %s1597_s9, 128 }
 0x437   :  { %p1174_p5 = scmp.ne.s32.totalorder %s1597_s9, %s1173_s23  ;;  %p1177_p6 = scmp.lt.u32.totalorder %s1173_s23, %s1597_s9 }
 0x439   :  { %p1179_p7 = pnand %p1177_p6, %p1174_p5 }
 0x43b   :  { %1182 = shalt.err (!%p1179_p7)
}
 0x43c   :  { %s1216_s25 = smov 64   ;;  %s1217_s26 = smov 4   ;;  %vm930_vm14 = vcmask 257024  }
 0x43d   :  { %953 = dma.vmem_to_hbm [thread:$0]  %s948_s21, 128, %s1597_s9, [#allocation6], %s1216_s25, %s1216_s25, %s1217_s26  }
 0x43e   :  { %s1218_s29 = smov [#allocation3]  }
 0x43f   :  { %s938_s30 = sshll.u32 %s1218_s29, 4  ;;  %s939_s30 = int_to_ptr.vmem [resolvable:$true] %s938_s30 }
 0x440   :  { %s1183_s10 = scalar_lea.vmem %s939_s30, 64  ;;  %p1188_p9 = scmp.lt.s32.totalorder %s939_s30, %s939_s30 }
 0x441   :  { %p1184_p8 = scmp.ne.s32.totalorder %s939_s30, %s1183_s10  ;;  %p1189_p10 = scmp.lt.s32.totalorder %s1183_s10, %s1183_s10 }
 0x443   :  { %p1190_p11 = por %p1189_p10, %p1188_p9 }
 0x445   :  { %p1191_p12 = pnand %p1190_p11, %p1184_p8 }
 0x507   :  { %v926_v25 = vpop.f32.mrb[8].mxu1 }
 0x508   :  { %v1088_v26 = vpop.f32.mrb[9].mxu1  ;;  %931 = vst.msk [vmem:[#allocation3] sm:$0xf] %vm930_vm14, %v926_v25 }
 0x509   :  { %1194 = shalt.err (!%p1191_p12)
}
 0x50a   :  { %s1195_s12 = scalar_lea.hbm %s1596_s8, 64 }
 0x50b   :  { %p1196_p13 = scmp.ne.s32.totalorder %s1596_s8, %s1195_s12  ;;  %p1199_p0 = scmp.lt.u32.totalorder %s1195_s12, %s1596_s8 }
 0x50d   :  { %p1201_p1 = pnand %p1199_p0, %p1196_p13 }
 0x50f   :  { %1204 = shalt.err (!%p1201_p1)
}
 0x510   :  { %941 = dma.vmem_to_hbm [thread:$0]  %s939_s30, 64, %s1596_s8, [#allocation4]  }
 0x511   :  { %1205 = dma.done.wait [#allocation4], 64  }
 0x512   :  { %1206 = vsyncadd [#allocation4], 4294967232 }
 0x513   :  { %1207 = dma.done.wait [#allocation6], 128  }
 0x514   :  { %1208 = vsyncadd [#allocation6], 4294967168 }
 0x515   :  { %960 = vsyncpa [#allocation4], 1 }
 0x516   :  { %961 = vsyncpa [#allocation6], 1 }

</bundles_post_ra>
